<compile_context>
chip_gen: v5e
topology: v5e:2x2
jax: 0.10.0
libtpu: 0.0.40
codegen_flags: <defaults>
</compile_context>

<pallas_src>
import functools
import math

import jax
import jax.numpy as jnp
from jax.experimental import pallas as pl
from jax.experimental.pallas import tpu as pltpu


# ---------------------------------------------------------------------------
# In-kernel helpers
# ---------------------------------------------------------------------------
def _layernorm(x, gamma, beta, eps=1e-5):
    # torch.nn.LayerNorm semantics (biased variance, eps inside sqrt).
    # Two-pass moments to avoid E[x^2]-mu^2 cancellation for large-mean inputs.
    mu = jnp.mean(x, axis=-1, keepdims=True)
    xc = x - mu
    var = jnp.mean(xc * xc, axis=-1, keepdims=True)
    return xc * jax.lax.rsqrt(var + eps) * gamma + beta


def _perceiver_layer_kernel(
    x_ref,
    ln1_g_ref, ln1_b_ref,
    wqkv_ref, bqkv_ref,
    wo_ref, bo_ref,
    ln2_g_ref, ln2_b_ref,
    w1_ref, b1_ref,
    w2_ref, b2_ref,
    o_ref,
    *,
    n_heads: int,
    qk_channels: int,
    v_channels: int,
):
    bt, S, D = x_ref.shape
    dh = qk_channels // n_heads
    dv = v_channels // n_heads

    # Hoist weight/bias loads out of the batch loop.
    ln1_g = ln1_g_ref[...]
    ln1_b = ln1_b_ref[...]
    wqkv = wqkv_ref[...]          # (D, 2*qk + v) bf16; 1/sqrt(dh) folded into q cols
    bqkv = bqkv_ref[...]          # (1, 2*qk + v) f32;  1/sqrt(dh) folded into q cols
    bo = bo_ref[...]
    ln2_g = ln2_g_ref[...]
    ln2_b = ln2_b_ref[...]
    w1 = w1_ref[...]
    b1 = b1_ref[...]
    w2 = w2_ref[...]
    b2 = b2_ref[...]

    # Static loop over the (small) per-step batch block; every heavy op inside
    # is a plain 2-D matmul with a lane-dense output width.
    for bi in range(bt):
        x = x_ref[bi]                                            # (S, D) f32

        # --- PerceiverSelfAttention (layernorm2 is Identity for self-attn) ---
        xn = _layernorm(x, ln1_g, ln1_b)

        # Fused Q/K/V projection: one (S, D) @ (D, 2*qk + v) matmul.
        qkv = jnp.dot(xn.astype(jnp.bfloat16), wqkv,
                      preferred_element_type=jnp.float32) + bqkv  # (S, 2qk+v) f32

        # Attention heads + PerceiverSelfOutput dense, accumulated per head
        # directly into the query residual (no (H,S,D) intermediate).
        attn_out = x + bo                                        # (S, D) f32
        for h in range(n_heads):
            q_h = qkv[:, h * dh:(h + 1) * dh]                               # scaled q
            k_h = qkv[:, qk_channels + h * dh: qk_channels + (h + 1) * dh]
            v_h = qkv[:, 2 * qk_channels + h * dv: 2 * qk_channels + (h + 1) * dv]

            s = jnp.einsum("qd,kd->qk", q_h.astype(jnp.bfloat16),
                           k_h.astype(jnp.bfloat16),
                           preferred_element_type=jnp.float32)   # (S, S)
            s = s - jnp.max(s, axis=-1, keepdims=True)
            p = jnp.exp(s)
            p = p * pl.reciprocal(jnp.sum(p, axis=-1, keepdims=True))  # exact

            ctx_h = jnp.dot(p.astype(jnp.bfloat16), v_h.astype(jnp.bfloat16),
                            preferred_element_type=jnp.float32)  # (S, dv)
            attn_out = attn_out + jnp.dot(
                ctx_h.astype(jnp.bfloat16), wo_ref[h],
                preferred_element_type=jnp.float32)              # (S, D)

        # --- feed_forward_chunk: LayerNorm -> dense1 -> gelu -> dense2 -------
        y = _layernorm(attn_out, ln2_g, ln2_b)
        h1 = jnp.dot(y.astype(jnp.bfloat16), w1,
                     preferred_element_type=jnp.float32) + b1
        # TODO(synk): torch F.gelu defaults to exact erf; tanh approximation is
        # used for guaranteed Mosaic (EUP) lowering.
        h1 = jax.nn.gelu(h1, approximate=True)
        mlp = jnp.dot(h1.astype(jnp.bfloat16), w2,
                      preferred_element_type=jnp.float32) + b2

        # --- final residual: layer_output + attention_output -----------------
        o_ref[bi] = (mlp + attn_out).astype(o_ref.dtype)


# ---------------------------------------------------------------------------
# One-time weight preparation (cache the result; do NOT rebuild per call)
# ---------------------------------------------------------------------------
def prepare_params(params, *, n_heads):
    qk_channels = params["wq"].shape[1]
    v_channels = params["wv"].shape[1]
    out_channels = params["wo"].shape[1]
    dh = qk_channels // n_heads
    dv = v_channels // n_heads
    inv_sqrt_dh = 1.0 / math.sqrt(dh)

    # Fold the 1/sqrt(dh) score scaling into the query projection (weight+bias).
    wqkv = jnp.concatenate(
        [params["wq"] * inv_sqrt_dh, params["wk"], params["wv"]], axis=1
    ).astype(jnp.bfloat16)                                       # (D, 2*qk + v)
    bqkv = jnp.concatenate(
        [params["bq"] * inv_sqrt_dh, params["bk"], params["bv"]], axis=1
    ).astype(jnp.float32)                                        # (1, 2*qk + v)
    wo = params["wo"].reshape(n_heads, dv, out_channels).astype(jnp.bfloat16)

    prepared = (
        params["ln1_g"], params["ln1_b"],
        wqkv, bqkv,
        wo, params["bo"],
        params["ln2_g"], params["ln2_b"],
        params["w1"].astype(jnp.bfloat16), params["b1"],
        params["w2"].astype(jnp.bfloat16), params["b2"],
    )
    meta = dict(n_heads=n_heads, qk_channels=qk_channels, v_channels=v_channels)
    return prepared, meta


# ---------------------------------------------------------------------------
# Call construction helpers
# ---------------------------------------------------------------------------
@functools.lru_cache(maxsize=1)
def _supports_resident_vmem_operands() -> bool:
    """Narrow one-time feature probe for whole-array memory_space=VMEM operand
    specs (weights resident once, not double-buffered per grid step)."""
    def probe(w_ref, o_ref):
        o_ref[...] = w_ref[...] + 1.0
    try:
        fn = pl.pallas_call(
            probe,
            out_shape=jax.ShapeDtypeStruct((8, 128), jnp.float32),
            grid=(1,),
            in_specs=[pl.BlockSpec(memory_space=pltpu.MemorySpace.VMEM)],
            out_specs=pl.BlockSpec((8, 128), lambda i: (0, 0)),
        )
        jax.block_until_ready(fn(jnp.zeros((8, 128), jnp.float32)))
        return True
    except Exception:  # probe only; the real pallas_call never falls back silently
        return False


def _pick_batch_block(B, S, D, hidden, c3):
    # Amortize per-grid-step pipeline overhead, keep >=2 grid steps where
    # possible (v7x dual TensorCore), cap per-step f32 activation footprint.
    act_budget = 4 << 20
    per_elem = 4 * S * (4 * D + c3 + hidden)
    cap = max(1, act_budget // max(per_elem, 1))
    bt = min(max(1, B // 2), cap)
    while B % bt:
        bt -= 1
    return max(bt, 1)


def _pick_vmem_limit(weight_bytes, act_bytes_per_step):
    phys = 128 << 20
    try:
        info = pltpu.get_tpu_info()
        phys = int(getattr(info, "vmem_capacity_bytes", phys))
    except Exception:
        pass
    want = int(1.5 * weight_bytes + 3 * act_bytes_per_step) + (16 << 20)
    return int(min(max(want, 32 << 20), int(phys * 0.75)))


def perceiver_layer(x, prepared, meta, *, batch_block=None):
    """x: (B, S, D) float32; `prepared, meta = prepare_params(...)` (built once)."""
    B, S, D = x.shape
    n_heads = meta["n_heads"]
    qk_channels = meta["qk_channels"]
    v_channels = meta["v_channels"]
    hidden = prepared[8].shape[1]                     # w1: (D, hidden)
    c3 = 2 * qk_channels + v_channels

    bt = batch_block or _pick_batch_block(B, S, D, hidden, c3)
    assert B % bt == 0, "batch_block must divide batch size"
    grid = (B // bt,)

    resident = _supports_resident_vmem_operands()
    if resident:
        w_specs = [pl.BlockSpec(memory_space=pltpu.MemorySpace.VMEM)
                   for _ in prepared]
    else:
        # Full-shape blocks, constant index map (these get double-buffered).
        w_specs = [pl.BlockSpec(p.shape, lambda i, nd=p.ndim: (0,) * nd)
                   for p in prepared]

    weight_bytes = sum(int(p.size) * p.dtype.itemsize for p in prepared)
    act_bytes = 4 * bt * S * (4 * D + c3 + hidden)
    vmem_limit = _pick_vmem_limit(weight_bytes * (1 if resident else 2), act_bytes)

    kernel = functools.partial(
        _perceiver_layer_kernel,
        n_heads=n_heads, qk_channels=qk_channels, v_channels=v_channels)

    fn = pl.pallas_call(
        kernel,
        out_shape=jax.ShapeDtypeStruct((B, S, D), x.dtype),
        grid=grid,
        in_specs=[pl.BlockSpec((bt, S, D), lambda i: (i, 0, 0))] + w_specs,
        out_specs=pl.BlockSpec((bt, S, D), lambda i: (i, 0, 0)),
        compiler_params=pltpu.CompilerParams(
            dimension_semantics=("parallel",),
            vmem_limit_bytes=vmem_limit,
        ),
    )
    return fn(x, *prepared)


# ---------------------------------------------------------------------------
# Synthetic params + pure-JAX reference (for a sanity check)
# ---------------------------------------------------------------------------
def init_params(key, q_dim, n_heads, widening_factor):
    qk_channels = q_dim
    v_channels = q_dim
    hidden = widening_factor * q_dim
    keys = jax.random.split(key, 8)

    def w(k, shape, scale=0.05):
        return (scale * jax.random.normal(k, shape)).astype(jnp.float32)

    return {
        "ln1_g": jnp.ones((1, q_dim), jnp.float32),
        "ln1_b": jnp.zeros((1, q_dim), jnp.float32),
        "wq": w(keys[0], (q_dim, qk_channels)),
        "bq": jnp.zeros((1, qk_channels), jnp.float32),
        "wk": w(keys[1], (q_dim, qk_channels)),
        "bk": w(keys[2], (1, qk_channels)),   # key.bias is xavier_normal_ (non-zero)
        "wv": w(keys[3], (q_dim, v_channels)),
        "bv": w(keys[4], (1, v_channels)),    # value.bias is xavier_normal_ (non-zero)
        "wo": w(keys[5], (v_channels, q_dim)),
        "bo": jnp.zeros((1, q_dim), jnp.float32),
        "ln2_g": jnp.ones((1, q_dim), jnp.float32),
        "ln2_b": jnp.zeros((1, q_dim), jnp.float32),
        "w1": w(keys[6], (q_dim, hidden)),
        "b1": jnp.zeros((1, hidden), jnp.float32),
        "w2": w(keys[7], (hidden, q_dim)),
        "b2": jnp.zeros((1, q_dim), jnp.float32),
    }


def perceiver_layer_ref(x, params, *, n_heads):
    B, S, D = x.shape
    qk = params["wq"].shape[1]
    v_ch = params["wv"].shape[1]
    dh, dv = qk // n_heads, v_ch // n_heads

    def ln(t, g, b, eps=1e-5):
        mu = jnp.mean(t, -1, keepdims=True)
        var = jnp.mean((t - mu) ** 2, -1, keepdims=True)
        return (t - mu) / jnp.sqrt(var + eps) * g + b

    xn = ln(x, params["ln1_g"], params["ln1_b"])
    q = (xn @ params["wq"] + params["bq"]).reshape(B, S, n_heads, dh).transpose(0, 2, 1, 3)
    k = (xn @ params["wk"] + params["bk"]).reshape(B, S, n_heads, dh).transpose(0, 2, 1, 3)
    v = (xn @ params["wv"] + params["bv"]).reshape(B, S, n_heads, dv).transpose(0, 2, 1, 3)
    s = (q @ jnp.swapaxes(k, -1, -2)) / math.sqrt(dh)
    p = jax.nn.softmax(s, axis=-1)
    ctx = (p @ v).transpose(0, 2, 1, 3).reshape(B, S, n_heads * dv)
    attn = ctx @ params["wo"] + params["bo"] + x
    y = ln(attn, params["ln2_g"], params["ln2_b"])
    h1 = jax.nn.gelu(y @ params["w1"] + params["b1"], approximate=True)
    mlp = h1 @ params["w2"] + params["b2"]
    return mlp + attn


if __name__ == "__main__":
    B, S, D = 2, 8, 32          # batch, latent seq len, q_dim (= kv_dim)
    N_HEADS = 4
    WIDENING = 4

    root = jax.random.PRNGKey(0)
    k_x, k_p = jax.random.split(root)
    x = jax.random.normal(k_x, (B, S, D), jnp.float32)
    params = init_params(k_p, q_dim=D, n_heads=N_HEADS, widening_factor=WIDENING)

    prepared, meta = prepare_params(params, n_heads=N_HEADS)   # one-time weight prep
    out = perceiver_layer(x, prepared, meta)
    out = jax.block_until_ready(out)

    assert out.shape == (B, S, D)
    assert bool(jnp.all(jnp.isfinite(out)))
    ref = perceiver_layer_ref(x, params, n_heads=N_HEADS)
    assert float(jnp.max(jnp.abs(out - ref))) < 5e-2  # bf16-matmul tolerance
    print("KERNEL_OK")
</pallas_src>

<mosaic_0001>
module attributes {stable_mosaic.version = 11 : i64} {
  func.func @probe(%arg0: i32, %arg1: memref<8x128xf32, #tpu.memory_space<vmem>>, %arg2: memref<8x128xf32, #tpu.memory_space<vmem>>) attributes {dimension_semantics = [#tpu.dimension_semantics<arbitrary>], iteration_bounds = array<i64: 1>, scalar_prefetch = 0 : i64, scratch_operands = 0 : i64, tpu.core_type = #tpu.core_type<tc>, window_params = [{pipeline_mode = #tpu.pipeline_mode<synchronous>, transform_indices = @transform_0, window_bounds = array<i64: 8, 128>}, {pipeline_mode = #tpu.pipeline_mode<synchronous>, transform_indices = @transform_1, window_bounds = array<i64: 8, 128>}]} {
    %c0 = arith.constant 0 : index
    %c0_0 = arith.constant 0 : index
    %0 = vector.load %arg1[%c0, %c0_0] : memref<8x128xf32, #tpu.memory_space<vmem>>, vector<8x128xf32>
    %cst = arith.constant 1.000000e+00 : f32
    %1 = vector.broadcast %cst : f32 to vector<8x128xf32>
    %2 = arith.addf %0, %1 : vector<8x128xf32>
    %c0_1 = arith.constant 0 : index
    %c0_2 = arith.constant 0 : index
    %3 = vector.load %arg2[%c0_1, %c0_2] : memref<8x128xf32, #tpu.memory_space<vmem>>, vector<8x128xf32>
    tpu.vector_store %arg2[%c0_1, %c0_2], %2 {strides = array<i32>} : memref<8x128xf32, #tpu.memory_space<vmem>>, vector<8x128xf32>,
    return
  }
  func.func @transform_0(%arg0: i32) -> (i32, i32) {
    %c0_i32 = arith.constant 0 : i32
    %c0_i32_0 = arith.constant 0 : i32
    %c0_i32_1 = arith.constant 0 : i32
    return %c0_i32, %c0_i32_0 : i32, i32
  }
  func.func @transform_1(%arg0: i32) -> (i32, i32) {
    %c0_i32 = arith.constant 0 : i32
    %c0_i32_0 = arith.constant 0 : i32
    %c0_i32_1 = arith.constant 0 : i32
    return %c0_i32, %c0_i32_0 : i32, i32
  }
}

module attributes {stable_mosaic.version = 11 : i64} {
  func.func @_perceiver_layer_kernel(%arg0: i32, %arg1: memref<1x8x32xf32, #tpu.memory_space<vmem>>, %arg2: memref<1x32xf32, #tpu.memory_space<vmem>>, %arg3: memref<1x32xf32, #tpu.memory_space<vmem>>, %arg4: memref<32x96xbf16, #tpu.memory_space<vmem>>, %arg5: memref<1x96xf32, #tpu.memory_space<vmem>>, %arg6: memref<4x8x32xbf16, #tpu.memory_space<vmem>>, %arg7: memref<1x32xf32, #tpu.memory_space<vmem>>, %arg8: memref<1x32xf32, #tpu.memory_space<vmem>>, %arg9: memref<1x32xf32, #tpu.memory_space<vmem>>, %arg10: memref<32x128xbf16, #tpu.memory_space<vmem>>, %arg11: memref<1x128xf32, #tpu.memory_space<vmem>>, %arg12: memref<128x32xbf16, #tpu.memory_space<vmem>>, %arg13: memref<1x32xf32, #tpu.memory_space<vmem>>, %arg14: memref<1x8x32xf32, #tpu.memory_space<vmem>>) attributes {dimension_semantics = [#tpu.dimension_semantics<parallel>], iteration_bounds = array<i64: 2>, scalar_prefetch = 0 : i64, scratch_operands = 0 : i64, tpu.core_type = #tpu.core_type<tc>, window_params = [{transform_indices = @transform_0, window_bounds = array<i64: 1, 8, 32>}, {pipeline_mode = #tpu.pipeline_mode<synchronous>, transform_indices = @transform_1, window_bounds = array<i64: 1, 32>}, {pipeline_mode = #tpu.pipeline_mode<synchronous>, transform_indices = @transform_2, window_bounds = array<i64: 1, 32>}, {pipeline_mode = #tpu.pipeline_mode<synchronous>, transform_indices = @transform_3, window_bounds = array<i64: 32, 96>}, {pipeline_mode = #tpu.pipeline_mode<synchronous>, transform_indices = @transform_4, window_bounds = array<i64: 1, 96>}, {pipeline_mode = #tpu.pipeline_mode<synchronous>, transform_indices = @transform_5, window_bounds = array<i64: 4, 8, 32>}, {pipeline_mode = #tpu.pipeline_mode<synchronous>, transform_indices = @transform_6, window_bounds = array<i64: 1, 32>}, {pipeline_mode = #tpu.pipeline_mode<synchronous>, transform_indices = @transform_7, window_bounds = array<i64: 1, 32>}, {pipeline_mode = #tpu.pipeline_mode<synchronous>, transform_indices = @transform_8, window_bounds = array<i64: 1, 32>}, {pipeline_mode = #tpu.pipeline_mode<synchronous>, transform_indices = @transform_9, window_bounds = array<i64: 32, 128>}, {pipeline_mode = #tpu.pipeline_mode<synchronous>, transform_indices = @transform_10, window_bounds = array<i64: 1, 128>}, {pipeline_mode = #tpu.pipeline_mode<synchronous>, transform_indices = @transform_11, window_bounds = array<i64: 128, 32>}, {pipeline_mode = #tpu.pipeline_mode<synchronous>, transform_indices = @transform_12, window_bounds = array<i64: 1, 32>}, {transform_indices = @transform_13, window_bounds = array<i64: 1, 8, 32>}]} {
    %c0 = arith.constant 0 : index
    %c0_0 = arith.constant 0 : index
    %0 = vector.load %arg2[%c0, %c0_0] : memref<1x32xf32, #tpu.memory_space<vmem>>, vector<1x32xf32>
    %c0_1 = arith.constant 0 : index
    %c0_2 = arith.constant 0 : index
    %1 = vector.load %arg3[%c0_1, %c0_2] : memref<1x32xf32, #tpu.memory_space<vmem>>, vector<1x32xf32>
    %c0_3 = arith.constant 0 : index
    %c0_4 = arith.constant 0 : index
    %2 = vector.load %arg4[%c0_3, %c0_4] : memref<32x96xbf16, #tpu.memory_space<vmem>>, vector<32x96xbf16>
    %c0_5 = arith.constant 0 : index
    %c0_6 = arith.constant 0 : index
    %3 = vector.load %arg5[%c0_5, %c0_6] : memref<1x96xf32, #tpu.memory_space<vmem>>, vector<1x96xf32>
    %c0_7 = arith.constant 0 : index
    %c0_8 = arith.constant 0 : index
    %4 = vector.load %arg7[%c0_7, %c0_8] : memref<1x32xf32, #tpu.memory_space<vmem>>, vector<1x32xf32>
    %c0_9 = arith.constant 0 : index
    %c0_10 = arith.constant 0 : index
    %5 = vector.load %arg8[%c0_9, %c0_10] : memref<1x32xf32, #tpu.memory_space<vmem>>, vector<1x32xf32>
    %c0_11 = arith.constant 0 : index
    %c0_12 = arith.constant 0 : index
    %6 = vector.load %arg9[%c0_11, %c0_12] : memref<1x32xf32, #tpu.memory_space<vmem>>, vector<1x32xf32>
    %c0_13 = arith.constant 0 : index
    %c0_14 = arith.constant 0 : index
    %7 = vector.load %arg10[%c0_13, %c0_14] : memref<32x128xbf16, #tpu.memory_space<vmem>>, vector<32x128xbf16>
    %c0_15 = arith.constant 0 : index
    %c0_16 = arith.constant 0 : index
    %8 = vector.load %arg11[%c0_15, %c0_16] : memref<1x128xf32, #tpu.memory_space<vmem>>, vector<1x128xf32>
    %c0_17 = arith.constant 0 : index
    %c0_18 = arith.constant 0 : index
    %9 = vector.load %arg12[%c0_17, %c0_18] : memref<128x32xbf16, #tpu.memory_space<vmem>>, vector<128x32xbf16>
    %c0_19 = arith.constant 0 : index
    %c0_20 = arith.constant 0 : index
    %10 = vector.load %arg13[%c0_19, %c0_20] : memref<1x32xf32, #tpu.memory_space<vmem>>, vector<1x32xf32>
    %c0_21 = arith.constant 0 : index
    %c0_22 = arith.constant 0 : index
    %c0_23 = arith.constant 0 : index
    %11 = vector.load %arg1[%c0_21, %c0_22, %c0_23] : memref<1x8x32xf32, #tpu.memory_space<vmem>>, vector<1x8x32xf32>
    %12 = vector.shape_cast %11 : vector<1x8x32xf32> to vector<8x32xf32>
    %cst = arith.constant dense<0.000000e+00> : vector<8xf32>
    %13 = vector.multi_reduction <add>, %12, %cst [1] : vector<8x32xf32> to vector<8xf32>
    %14 = vector.shape_cast %13 : vector<8xf32> to vector<8x1xf32>
    %cst_24 = arith.constant 3.200000e+01 : f32
    %15 = vector.broadcast %cst_24 : f32 to vector<8x1xf32>
    %16 = arith.divf %14, %15 : vector<8x1xf32>
    %17 = vector.broadcast %16 : vector<8x1xf32> to vector<8x32xf32>
    %18 = arith.subf %12, %17 : vector<8x32xf32>
    %19 = arith.mulf %18, %18 : vector<8x32xf32>
    %cst_25 = arith.constant dense<0.000000e+00> : vector<8xf32>
    %20 = vector.multi_reduction <add>, %19, %cst_25 [1] : vector<8x32xf32> to vector<8xf32>
    %21 = vector.shape_cast %20 : vector<8xf32> to vector<8x1xf32>
    %cst_26 = arith.constant 3.200000e+01 : f32
    %22 = vector.broadcast %cst_26 : f32 to vector<8x1xf32>
    %23 = arith.divf %21, %22 : vector<8x1xf32>
    %cst_27 = arith.constant 9.99999974E-6 : f32
    %24 = vector.broadcast %cst_27 : f32 to vector<8x1xf32>
    %25 = arith.addf %23, %24 : vector<8x1xf32>
    %26 = math.rsqrt %25 : vector<8x1xf32>
    %27 = vector.broadcast %26 : vector<8x1xf32> to vector<8x32xf32>
    %28 = arith.mulf %18, %27 : vector<8x32xf32>
    %29 = vector.broadcast %0 : vector<1x32xf32> to vector<8x32xf32>
    %30 = arith.mulf %28, %29 : vector<8x32xf32>
    %31 = vector.broadcast %1 : vector<1x32xf32> to vector<8x32xf32>
    %32 = arith.addf %30, %31 : vector<8x32xf32>
    %33 = arith.truncf %32 : vector<8x32xf32> to vector<8x32xbf16>
    %cst_28 = arith.constant dense<0.000000e+00> : vector<8x96xf32>
    %34 = tpu.matmul %33, %2, %cst_28 {dimension_numbers = #tpu.dot_dimension_numbers<[1], [0], [0], [1], [0, 0, 1, 1], [], []>} : vector<8x32xbf16>, vector<32x96xbf16>, vector<8x96xf32> -> vector<8x96xf32>
    %35 = vector.broadcast %3 : vector<1x96xf32> to vector<8x96xf32>
    %36 = arith.addf %34, %35 : vector<8x96xf32>
    %37 = vector.broadcast %4 : vector<1x32xf32> to vector<8x32xf32>
    %38 = arith.addf %12, %37 : vector<8x32xf32>
    %39 = vector.extract_strided_slice %36 {offsets = [0, 0], sizes = [8, 8], strides = [1, 1]} : vector<8x96xf32> to vector<8x8xf32>
    %40 = vector.extract_strided_slice %36 {offsets = [0, 32], sizes = [8, 8], strides = [1, 1]} : vector<8x96xf32> to vector<8x8xf32>
    %41 = vector.extract_strided_slice %36 {offsets = [0, 64], sizes = [8, 8], strides = [1, 1]} : vector<8x96xf32> to vector<8x8xf32>
    %42 = arith.truncf %39 : vector<8x8xf32> to vector<8x8xbf16>
    %43 = arith.truncf %40 : vector<8x8xf32> to vector<8x8xbf16>
    "tpu.trace_start"() <{level = 10 : i32, message = "qd,kd->qk"}> : () -> ()
    %cst_29 = arith.constant dense<0.000000e+00> : vector<8x8xf32>
    %44 = tpu.matmul %42, %43, %cst_29 {dimension_numbers = #tpu.dot_dimension_numbers<[1], [1], [0], [0], [0, 0, 1, 0], [], []>} : vector<8x8xbf16>, vector<8x8xbf16>, vector<8x8xf32> -> vector<8x8xf32>
    "tpu.trace_stop"() : () -> ()
    %cst_30 = arith.constant dense<0xFF800000> : vector<8xf32>
    %45 = vector.multi_reduction <maximumf>, %44, %cst_30 [1] : vector<8x8xf32> to vector<8xf32>
    %46 = vector.shape_cast %45 : vector<8xf32> to vector<8x1xf32>
    %47 = vector.broadcast %46 : vector<8x1xf32> to vector<8x8xf32>
    %48 = arith.subf %44, %47 : vector<8x8xf32>
    %49 = math.exp %48 : vector<8x8xf32>
    %cst_31 = arith.constant dense<0.000000e+00> : vector<8xf32>
    %50 = vector.multi_reduction <add>, %49, %cst_31 [1] : vector<8x8xf32> to vector<8xf32>
    %51 = vector.shape_cast %50 : vector<8xf32> to vector<8x1xf32>
    %52 = tpu.reciprocal %51 : vector<8x1xf32> -> vector<8x1xf32>
    %53 = vector.broadcast %52 : vector<8x1xf32> to vector<8x8xf32>
    %54 = arith.mulf %49, %53 : vector<8x8xf32>
    %55 = arith.truncf %54 : vector<8x8xf32> to vector<8x8xbf16>
    %56 = arith.truncf %41 : vector<8x8xf32> to vector<8x8xbf16>
    %cst_32 = arith.constant dense<0.000000e+00> : vector<8x8xf32>
    %57 = tpu.matmul %55, %56, %cst_32 {dimension_numbers = #tpu.dot_dimension_numbers<[1], [0], [0], [1], [0, 0, 1, 1], [], []>} : vector<8x8xbf16>, vector<8x8xbf16>, vector<8x8xf32> -> vector<8x8xf32>
    %58 = arith.truncf %57 : vector<8x8xf32> to vector<8x8xbf16>
    %c0_33 = arith.constant 0 : index
    %c0_34 = arith.constant 0 : index
    %c0_35 = arith.constant 0 : index
    %59 = vector.load %arg6[%c0_33, %c0_34, %c0_35] : memref<4x8x32xbf16, #tpu.memory_space<vmem>>, vector<1x8x32xbf16>
    %60 = vector.shape_cast %59 : vector<1x8x32xbf16> to vector<8x32xbf16>
    %cst_36 = arith.constant dense<0.000000e+00> : vector<8x32xf32>
    %61 = tpu.matmul %58, %60, %cst_36 {dimension_numbers = #tpu.dot_dimension_numbers<[1], [0], [0], [1], [0, 0, 1, 1], [], []>} : vector<8x8xbf16>, vector<8x32xbf16>, vector<8x32xf32> -> vector<8x32xf32>
    %62 = arith.addf %38, %61 : vector<8x32xf32>
    %63 = vector.extract_strided_slice %36 {offsets = [0, 8], sizes = [8, 8], strides = [1, 1]} : vector<8x96xf32> to vector<8x8xf32>
    %64 = vector.extract_strided_slice %36 {offsets = [0, 40], sizes = [8, 8], strides = [1, 1]} : vector<8x96xf32> to vector<8x8xf32>
    %65 = vector.extract_strided_slice %36 {offsets = [0, 72], sizes = [8, 8], strides = [1, 1]} : vector<8x96xf32> to vector<8x8xf32>
    %66 = arith.truncf %63 : vector<8x8xf32> to vector<8x8xbf16>
    %67 = arith.truncf %64 : vector<8x8xf32> to vector<8x8xbf16>
    "tpu.trace_start"() <{level = 10 : i32, message = "qd,kd->qk"}> : () -> ()
    %cst_37 = arith.constant dense<0.000000e+00> : vector<8x8xf32>
    %68 = tpu.matmul %66, %67, %cst_37 {dimension_numbers = #tpu.dot_dimension_numbers<[1], [1], [0], [0], [0, 0, 1, 0], [], []>} : vector<8x8xbf16>, vector<8x8xbf16>, vector<8x8xf32> -> vector<8x8xf32>
    "tpu.trace_stop"() : () -> ()
    %cst_38 = arith.constant dense<0xFF800000> : vector<8xf32>
    %69 = vector.multi_reduction <maximumf>, %68, %cst_38 [1] : vector<8x8xf32> to vector<8xf32>
    %70 = vector.shape_cast %69 : vector<8xf32> to vector<8x1xf32>
    %71 = vector.broadcast %70 : vector<8x1xf32> to vector<8x8xf32>
    %72 = arith.subf %68, %71 : vector<8x8xf32>
    %73 = math.exp %72 : vector<8x8xf32>
    %cst_39 = arith.constant dense<0.000000e+00> : vector<8xf32>
    %74 = vector.multi_reduction <add>, %73, %cst_39 [1] : vector<8x8xf32> to vector<8xf32>
    %75 = vector.shape_cast %74 : vector<8xf32> to vector<8x1xf32>
    %76 = tpu.reciprocal %75 : vector<8x1xf32> -> vector<8x1xf32>
    %77 = vector.broadcast %76 : vector<8x1xf32> to vector<8x8xf32>
    %78 = arith.mulf %73, %77 : vector<8x8xf32>
    %79 = arith.truncf %78 : vector<8x8xf32> to vector<8x8xbf16>
    %80 = arith.truncf %65 : vector<8x8xf32> to vector<8x8xbf16>
    %cst_40 = arith.constant dense<0.000000e+00> : vector<8x8xf32>
    %81 = tpu.matmul %79, %80, %cst_40 {dimension_numbers = #tpu.dot_dimension_numbers<[1], [0], [0], [1], [0, 0, 1, 1], [], []>} : vector<8x8xbf16>, vector<8x8xbf16>, vector<8x8xf32> -> vector<8x8xf32>
    %82 = arith.truncf %81 : vector<8x8xf32> to vector<8x8xbf16>
    %c1 = arith.constant 1 : index
    %c0_41 = arith.constant 0 : index
    %c0_42 = arith.constant 0 : index
    %83 = vector.load %arg6[%c1, %c0_41, %c0_42] : memref<4x8x32xbf16, #tpu.memory_space<vmem>>, vector<1x8x32xbf16>
    %84 = vector.shape_cast %83 : vector<1x8x32xbf16> to vector<8x32xbf16>
    %cst_43 = arith.constant dense<0.000000e+00> : vector<8x32xf32>
    %85 = tpu.matmul %82, %84, %cst_43 {dimension_numbers = #tpu.dot_dimension_numbers<[1], [0], [0], [1], [0, 0, 1, 1], [], []>} : vector<8x8xbf16>, vector<8x32xbf16>, vector<8x32xf32> -> vector<8x32xf32>
    %86 = arith.addf %62, %85 : vector<8x32xf32>
    %87 = vector.extract_strided_slice %36 {offsets = [0, 16], sizes = [8, 8], strides = [1, 1]} : vector<8x96xf32> to vector<8x8xf32>
    %88 = vector.extract_strided_slice %36 {offsets = [0, 48], sizes = [8, 8], strides = [1, 1]} : vector<8x96xf32> to vector<8x8xf32>
    %89 = vector.extract_strided_slice %36 {offsets = [0, 80], sizes = [8, 8], strides = [1, 1]} : vector<8x96xf32> to vector<8x8xf32>
    %90 = arith.truncf %87 : vector<8x8xf32> to vector<8x8xbf16>
    %91 = arith.truncf %88 : vector<8x8xf32> to vector<8x8xbf16>
    "tpu.trace_start"() <{level = 10 : i32, message = "qd,kd->qk"}> : () -> ()
    %cst_44 = arith.constant dense<0.000000e+00> : vector<8x8xf32>
    %92 = tpu.matmul %90, %91, %cst_44 {dimension_numbers = #tpu.dot_dimension_numbers<[1], [1], [0], [0], [0, 0, 1, 0], [], []>} : vector<8x8xbf16>, vector<8x8xbf16>, vector<8x8xf32> -> vector<8x8xf32>
    "tpu.trace_stop"() : () -> ()
    %cst_45 = arith.constant dense<0xFF800000> : vector<8xf32>
    %93 = vector.multi_reduction <maximumf>, %92, %cst_45 [1] : vector<8x8xf32> to vector<8xf32>
    %94 = vector.shape_cast %93 : vector<8xf32> to vector<8x1xf32>
    %95 = vector.broadcast %94 : vector<8x1xf32> to vector<8x8xf32>
    %96 = arith.subf %92, %95 : vector<8x8xf32>
    %97 = math.exp %96 : vector<8x8xf32>
    %cst_46 = arith.constant dense<0.000000e+00> : vector<8xf32>
    %98 = vector.multi_reduction <add>, %97, %cst_46 [1] : vector<8x8xf32> to vector<8xf32>
    %99 = vector.shape_cast %98 : vector<8xf32> to vector<8x1xf32>
    %100 = tpu.reciprocal %99 : vector<8x1xf32> -> vector<8x1xf32>
    %101 = vector.broadcast %100 : vector<8x1xf32> to vector<8x8xf32>
    %102 = arith.mulf %97, %101 : vector<8x8xf32>
    %103 = arith.truncf %102 : vector<8x8xf32> to vector<8x8xbf16>
    %104 = arith.truncf %89 : vector<8x8xf32> to vector<8x8xbf16>
    %cst_47 = arith.constant dense<0.000000e+00> : vector<8x8xf32>
    %105 = tpu.matmul %103, %104, %cst_47 {dimension_numbers = #tpu.dot_dimension_numbers<[1], [0], [0], [1], [0, 0, 1, 1], [], []>} : vector<8x8xbf16>, vector<8x8xbf16>, vector<8x8xf32> -> vector<8x8xf32>
    %106 = arith.truncf %105 : vector<8x8xf32> to vector<8x8xbf16>
    %c2 = arith.constant 2 : index
    %c0_48 = arith.constant 0 : index
    %c0_49 = arith.constant 0 : index
    %107 = vector.load %arg6[%c2, %c0_48, %c0_49] : memref<4x8x32xbf16, #tpu.memory_space<vmem>>, vector<1x8x32xbf16>
    %108 = vector.shape_cast %107 : vector<1x8x32xbf16> to vector<8x32xbf16>
    %cst_50 = arith.constant dense<0.000000e+00> : vector<8x32xf32>
    %109 = tpu.matmul %106, %108, %cst_50 {dimension_numbers = #tpu.dot_dimension_numbers<[1], [0], [0], [1], [0, 0, 1, 1], [], []>} : vector<8x8xbf16>, vector<8x32xbf16>, vector<8x32xf32> -> vector<8x32xf32>
    %110 = arith.addf %86, %109 : vector<8x32xf32>
    %111 = vector.extract_strided_slice %36 {offsets = [0, 24], sizes = [8, 8], strides = [1, 1]} : vector<8x96xf32> to vector<8x8xf32>
    %112 = vector.extract_strided_slice %36 {offsets = [0, 56], sizes = [8, 8], strides = [1, 1]} : vector<8x96xf32> to vector<8x8xf32>
    %113 = vector.extract_strided_slice %36 {offsets = [0, 88], sizes = [8, 8], strides = [1, 1]} : vector<8x96xf32> to vector<8x8xf32>
    %114 = arith.truncf %111 : vector<8x8xf32> to vector<8x8xbf16>
    %115 = arith.truncf %112 : vector<8x8xf32> to vector<8x8xbf16>
    "tpu.trace_start"() <{level = 10 : i32, message = "qd,kd->qk"}> : () -> ()
    %cst_51 = arith.constant dense<0.000000e+00> : vector<8x8xf32>
    %116 = tpu.matmul %114, %115, %cst_51 {dimension_numbers = #tpu.dot_dimension_numbers<[1], [1], [0], [0], [0, 0, 1, 0], [], []>} : vector<8x8xbf16>, vector<8x8xbf16>, vector<8x8xf32> -> vector<8x8xf32>
    "tpu.trace_stop"() : () -> ()
    %cst_52 = arith.constant dense<0xFF800000> : vector<8xf32>
    %117 = vector.multi_reduction <maximumf>, %116, %cst_52 [1] : vector<8x8xf32> to vector<8xf32>
    %118 = vector.shape_cast %117 : vector<8xf32> to vector<8x1xf32>
    %119 = vector.broadcast %118 : vector<8x1xf32> to vector<8x8xf32>
    %120 = arith.subf %116, %119 : vector<8x8xf32>
    %121 = math.exp %120 : vector<8x8xf32>
    %cst_53 = arith.constant dense<0.000000e+00> : vector<8xf32>
    %122 = vector.multi_reduction <add>, %121, %cst_53 [1] : vector<8x8xf32> to vector<8xf32>
    %123 = vector.shape_cast %122 : vector<8xf32> to vector<8x1xf32>
    %124 = tpu.reciprocal %123 : vector<8x1xf32> -> vector<8x1xf32>
    %125 = vector.broadcast %124 : vector<8x1xf32> to vector<8x8xf32>
    %126 = arith.mulf %121, %125 : vector<8x8xf32>
    %127 = arith.truncf %126 : vector<8x8xf32> to vector<8x8xbf16>
    %128 = arith.truncf %113 : vector<8x8xf32> to vector<8x8xbf16>
    %cst_54 = arith.constant dense<0.000000e+00> : vector<8x8xf32>
    %129 = tpu.matmul %127, %128, %cst_54 {dimension_numbers = #tpu.dot_dimension_numbers<[1], [0], [0], [1], [0, 0, 1, 1], [], []>} : vector<8x8xbf16>, vector<8x8xbf16>, vector<8x8xf32> -> vector<8x8xf32>
    %130 = arith.truncf %129 : vector<8x8xf32> to vector<8x8xbf16>
    %c3 = arith.constant 3 : index
    %c0_55 = arith.constant 0 : index
    %c0_56 = arith.constant 0 : index
    %131 = vector.load %arg6[%c3, %c0_55, %c0_56] : memref<4x8x32xbf16, #tpu.memory_space<vmem>>, vector<1x8x32xbf16>
    %132 = vector.shape_cast %131 : vector<1x8x32xbf16> to vector<8x32xbf16>
    %cst_57 = arith.constant dense<0.000000e+00> : vector<8x32xf32>
    %133 = tpu.matmul %130, %132, %cst_57 {dimension_numbers = #tpu.dot_dimension_numbers<[1], [0], [0], [1], [0, 0, 1, 1], [], []>} : vector<8x8xbf16>, vector<8x32xbf16>, vector<8x32xf32> -> vector<8x32xf32>
    %134 = arith.addf %110, %133 : vector<8x32xf32>
    %cst_58 = arith.constant dense<0.000000e+00> : vector<8xf32>
    %135 = vector.multi_reduction <add>, %134, %cst_58 [1] : vector<8x32xf32> to vector<8xf32>
    %136 = vector.shape_cast %135 : vector<8xf32> to vector<8x1xf32>
    %cst_59 = arith.constant 3.200000e+01 : f32
    %137 = vector.broadcast %cst_59 : f32 to vector<8x1xf32>
    %138 = arith.divf %136, %137 : vector<8x1xf32>
    %139 = vector.broadcast %138 : vector<8x1xf32> to vector<8x32xf32>
    %140 = arith.subf %134, %139 : vector<8x32xf32>
    %141 = arith.mulf %140, %140 : vector<8x32xf32>
    %cst_60 = arith.constant dense<0.000000e+00> : vector<8xf32>
    %142 = vector.multi_reduction <add>, %141, %cst_60 [1] : vector<8x32xf32> to vector<8xf32>
    %143 = vector.shape_cast %142 : vector<8xf32> to vector<8x1xf32>
    %cst_61 = arith.constant 3.200000e+01 : f32
    %144 = vector.broadcast %cst_61 : f32 to vector<8x1xf32>
    %145 = arith.divf %143, %144 : vector<8x1xf32>
    %cst_62 = arith.constant 9.99999974E-6 : f32
    %146 = vector.broadcast %cst_62 : f32 to vector<8x1xf32>
    %147 = arith.addf %145, %146 : vector<8x1xf32>
    %148 = math.rsqrt %147 : vector<8x1xf32>
    %149 = vector.broadcast %148 : vector<8x1xf32> to vector<8x32xf32>
    %150 = arith.mulf %140, %149 : vector<8x32xf32>
    %151 = vector.broadcast %5 : vector<1x32xf32> to vector<8x32xf32>
    %152 = arith.mulf %150, %151 : vector<8x32xf32>
    %153 = vector.broadcast %6 : vector<1x32xf32> to vector<8x32xf32>
    %154 = arith.addf %152, %153 : vector<8x32xf32>
    %155 = arith.truncf %154 : vector<8x32xf32> to vector<8x32xbf16>
    %cst_63 = arith.constant dense<0.000000e+00> : vector<8x128xf32>
    %156 = tpu.matmul %155, %7, %cst_63 {dimension_numbers = #tpu.dot_dimension_numbers<[1], [0], [0], [1], [0, 0, 1, 1], [], []>} : vector<8x32xbf16>, vector<32x128xbf16>, vector<8x128xf32> -> vector<8x128xf32>
    %157 = vector.broadcast %8 : vector<1x128xf32> to vector<8x128xf32>
    %158 = arith.addf %156, %157 : vector<8x128xf32>
    %159 = arith.mulf %158, %158 : vector<8x128xf32>
    %160 = arith.mulf %158, %159 : vector<8x128xf32>
    %cst_64 = arith.constant 4.471500e-02 : f32
    %161 = vector.broadcast %cst_64 : f32 to vector<8x128xf32>
    %162 = arith.mulf %161, %160 : vector<8x128xf32>
    %163 = arith.addf %158, %162 : vector<8x128xf32>
    %cst_65 = arith.constant 0.797884583 : f32
    %164 = vector.broadcast %cst_65 : f32 to vector<8x128xf32>
    %165 = arith.mulf %164, %163 : vector<8x128xf32>
    %166 = math.tanh %165 : vector<8x128xf32>
    %cst_66 = arith.constant 1.000000e+00 : f32
    %167 = vector.broadcast %cst_66 : f32 to vector<8x128xf32>
    %168 = arith.addf %167, %166 : vector<8x128xf32>
    %cst_67 = arith.constant 5.000000e-01 : f32
    %169 = vector.broadcast %cst_67 : f32 to vector<8x128xf32>
    %170 = arith.mulf %169, %168 : vector<8x128xf32>
    %171 = arith.mulf %158, %170 : vector<8x128xf32>
    %172 = arith.truncf %171 : vector<8x128xf32> to vector<8x128xbf16>
    %cst_68 = arith.constant dense<0.000000e+00> : vector<8x32xf32>
    %173 = tpu.matmul %172, %9, %cst_68 {dimension_numbers = #tpu.dot_dimension_numbers<[1], [0], [0], [1], [0, 0, 1, 1], [], []>} : vector<8x128xbf16>, vector<128x32xbf16>, vector<8x32xf32> -> vector<8x32xf32>
    %174 = vector.broadcast %10 : vector<1x32xf32> to vector<8x32xf32>
    %175 = arith.addf %173, %174 : vector<8x32xf32>
    %176 = arith.addf %175, %134 : vector<8x32xf32>
    %c0_69 = arith.constant 0 : index
    %c0_70 = arith.constant 0 : index
    %c0_71 = arith.constant 0 : index
    %177 = vector.load %arg14[%c0_69, %c0_70, %c0_71] : memref<1x8x32xf32, #tpu.memory_space<vmem>>, vector<1x8x32xf32>
    %178 = vector.shape_cast %177 : vector<1x8x32xf32> to vector<8x32xf32>
    %179 = vector.shape_cast %176 : vector<8x32xf32> to vector<1x8x32xf32>
    tpu.vector_store %arg14[%c0_69, %c0_70, %c0_71], %179 {strides = array<i32>} : memref<1x8x32xf32, #tpu.memory_space<vmem>>, vector<1x8x32xf32>,
    return
  }
  func.func @transform_0(%arg0: i32) -> (i32, i32, i32) {
    %c0_i32 = arith.constant 0 : i32
    %c0_i32_0 = arith.constant 0 : i32
    %c0_i32_1 = arith.constant 0 : i32
    return %arg0, %c0_i32, %c0_i32_0 : i32, i32, i32
  }
  func.func @transform_1(%arg0: i32) -> (i32, i32) {
    %c0_i32 = arith.constant 0 : i32
    %c0_i32_0 = arith.constant 0 : i32
    %c0_i32_1 = arith.constant 0 : i32
    return %c0_i32, %c0_i32_0 : i32, i32
  }
  func.func @transform_2(%arg0: i32) -> (i32, i32) {
    %c0_i32 = arith.constant 0 : i32
    %c0_i32_0 = arith.constant 0 : i32
    %c0_i32_1 = arith.constant 0 : i32
    return %c0_i32, %c0_i32_0 : i32, i32
  }
  func.func @transform_3(%arg0: i32) -> (i32, i32) {
    %c0_i32 = arith.constant 0 : i32
    %c0_i32_0 = arith.constant 0 : i32
    %c0_i32_1 = arith.constant 0 : i32
    return %c0_i32, %c0_i32_0 : i32, i32
  }
  func.func @transform_4(%arg0: i32) -> (i32, i32) {
    %c0_i32 = arith.constant 0 : i32
    %c0_i32_0 = arith.constant 0 : i32
    %c0_i32_1 = arith.constant 0 : i32
    return %c0_i32, %c0_i32_0 : i32, i32
  }
  func.func @transform_5(%arg0: i32) -> (i32, i32, i32) {
    %c0_i32 = arith.constant 0 : i32
    %c0_i32_0 = arith.constant 0 : i32
    %c0_i32_1 = arith.constant 0 : i32
    %c0_i32_2 = arith.constant 0 : i32
    return %c0_i32, %c0_i32_0, %c0_i32_1 : i32, i32, i32
  }
  func.func @transform_6(%arg0: i32) -> (i32, i32) {
    %c0_i32 = arith.constant 0 : i32
    %c0_i32_0 = arith.constant 0 : i32
    %c0_i32_1 = arith.constant 0 : i32
    return %c0_i32, %c0_i32_0 : i32, i32
  }
  func.func @transform_7(%arg0: i32) -> (i32, i32) {
    %c0_i32 = arith.constant 0 : i32
    %c0_i32_0 = arith.constant 0 : i32
    %c0_i32_1 = arith.constant 0 : i32
    return %c0_i32, %c0_i32_0 : i32, i32
  }
  func.func @transform_8(%arg0: i32) -> (i32, i32) {
    %c0_i32 = arith.constant 0 : i32
    %c0_i32_0 = arith.constant 0 : i32
    %c0_i32_1 = arith.constant 0 : i32
    return %c0_i32, %c0_i32_0 : i32, i32
  }
  func.func @transform_9(%arg0: i32) -> (i32, i32) {
    %c0_i32 = arith.constant 0 : i32
    %c0_i32_0 = arith.constant 0 : i32
    %c0_i32_1 = arith.constant 0 : i32
    return %c0_i32, %c0_i32_0 : i32, i32
  }
  func.func @transform_10(%arg0: i32) -> (i32, i32) {
    %c0_i32 = arith.constant 0 : i32
    %c0_i32_0 = arith.constant 0 : i32
    %c0_i32_1 = arith.constant 0 : i32
    return %c0_i32, %c0_i32_0 : i32, i32
  }
  func.func @transform_11(%arg0: i32) -> (i32, i32) {
    %c0_i32 = arith.constant 0 : i32
    %c0_i32_0 = arith.constant 0 : i32
    %c0_i32_1 = arith.constant 0 : i32
    return %c0_i32, %c0_i32_0 : i32, i32
  }
  func.func @transform_12(%arg0: i32) -> (i32, i32) {
    %c0_i32 = arith.constant 0 : i32
    %c0_i32_0 = arith.constant 0 : i32
    %c0_i32_1 = arith.constant 0 : i32
    return %c0_i32, %c0_i32_0 : i32, i32
  }
  func.func @transform_13(%arg0: i32) -> (i32, i32, i32) {
    %c0_i32 = arith.constant 0 : i32
    %c0_i32_0 = arith.constant 0 : i32
    %c0_i32_1 = arith.constant 0 : i32
    return %arg0, %c0_i32, %c0_i32_0 : i32, i32, i32
  }
}

</mosaic_0001>

<bundles_post_ra>
// kernel: tpu_custom_call.1
= control target key start
LH: loop header
LB: loop body
LE: loop exit
PB: predicated region body
PF: predicated region fallthrough
CT: control target
= control target key end

     0   :  { %6 = vsyncpa [#allocation3], 0  ;;  %s115_s0 = inlined_call_operand.hbm [shape: f32[8,128], index: 0, kind: input, shape index: {}]   ;;  %s116_s1 = inlined_call_operand.hbm [shape: f32[8,128], index: 1, kind: output, shape index: {}]  }
   0x1   :  { %7 = vsyncpa [#allocation4], 0  ;;  %s13_s8 = sshll.u32 %s115_s0, 4  ;;  %s97_s9 = smov [#allocation2]   ;;  %s14_s8 = int_to_ptr.hbm [resolvable:$true] %s13_s8 }
   0x2   :  { %s15_s10 = sshll.u32 %s97_s9, 4  ;;  %s16_s10 = int_to_ptr.vmem [resolvable:$true] %s15_s10 }
   0x3   :  { %18 = dma.hbm_to_vmem [thread:$0]  %s14_s8, 128, %s16_s10, [#allocation3]  }
   0x4   :  { %93 = dma.done.wait [#allocation3], 128  }
   0x5   :  { %94 = vsyncadd [#allocation3], 4294967168  ;;  %s98_s11 = smov [#allocation5]   ;;  %s33_s15 = sshll.u32 %s116_s1, 4  ;;  %v23_v0 = vld [vmem:[#allocation2] sm:$0xff]  ;;  %s34_s15 = int_to_ptr.hbm [resolvable:$true] %s33_s15 }
   0x6   :  { %s31_s12 = sshll.u32 %s98_s11, 4  ;;  %v24_v1 = vadd.f32 1.0, %v23_v0  ;;  %s32_s12 = int_to_ptr.vmem [resolvable:$true] %s31_s12 }
   0x8   :  { %25 = vst [vmem:[#allocation5] sm:$0xff] %v24_v1 }
   0x9   :  { %36 = dma.vmem_to_hbm [thread:$0]  %s32_s12, 128, %s34_s15, [#allocation4]  }
   0xa   :  { %95 = dma.done.wait [#allocation4], 128  }
   0xb   :  { %96 = vsyncadd [#allocation4], 4294967168 }
   0xc   :  { %41 = vsyncpa [#allocation3], 1 }
   0xd   :  { %42 = vsyncpa [#allocation4], 1 }

// kernel: tpu_custom_call.1
= control target key start
LH: loop header
LB: loop body
LE: loop exit
PB: predicated region body
PF: predicated region fallthrough
CT: control target
= control target key end

     0   :  { %s1671_s0 = inlined_call_operand.vmem [shape: f32[2,8,32], index: 0, kind: input, shape index: {}]   ;;  %s1672_s1 = inlined_call_operand.vmem [shape: f32[1,32], index: 1, kind: input, shape index: {}]   ;;  %s1673_s2 = inlined_call_operand.vmem [shape: f32[1,32], index: 2, kind: input, shape index: {}]   ;;  %s1674_s3 = inlined_call_operand.vmem [shape: bf16[32,96], index: 3, kind: input, shape index: {}]   ;;  %s1675_s4 = inlined_call_operand.vmem [shape: f32[1,96], index: 4, kind: input, shape index: {}]   ;;  %s1676_s5 = inlined_call_operand.vmem [shape: bf16[4,8,32], index: 5, kind: input, shape index: {}]   ;;  %s1677_s6 = inlined_call_operand.vmem [shape: f32[1,32], index: 6, kind: input, shape index: {}]   ;;  %s1678_s7 = inlined_call_operand.vmem [shape: f32[1,32], index: 7, kind: input, shape index: {}]   ;;  %s1679_s8 = inlined_call_operand.vmem [shape: f32[1,32], index: 8, kind: input, shape index: {}]   ;;  %s1680_s9 = inlined_call_operand.vmem [shape: bf16[32,128], index: 9, kind: input, shape index: {}]   ;;  %s1681_s10 = inlined_call_operand.vmem [shape: f32[1,128], index: 10, kind: input, shape index: {}]   ;;  %s1682_s11 = inlined_call_operand.vmem [shape: bf16[128,32], index: 11, kind: input, shape index: {}]   ;;  %s1683_s12 = inlined_call_operand.vmem [shape: f32[1,32], index: 12, kind: input, shape index: {}]   ;;  %s1684_s13 = inlined_call_operand.hbm [shape: f32[2,8,32], index: 13, kind: output, shape index: {}]  }
   0x1   :  { %1685 = sst [smem:[#allocation5_spill]] %s1671_s0 }
   0x2   :  { %1686 = sst [smem:[#allocation6_spill]] %s1672_s1 }
   0x3   :  { %1687 = sst [smem:[#allocation7_spill]] %s1673_s2 }
   0x4   :  { %1688 = sst [smem:[#allocation8_spill]] %s1674_s3 }
   0x5   :  { %18 = vsyncpa [#allocation3], 0 }
   0x6   :  { %20 = vsyncpa [#allocation3 + $0x1], 0  ;;  %s1442_s25 = smov 0   ;;  %s1444_s26 = smov 0  }
   0x7   :  { %s1446_s27 = smov 0   ;;  %s1448_s28 = smov 0  }
   0x8 LB: > { %s1463_s29 = sadd.s32 4294967295, %s1358_s28   ;;  %s1126_s30 = sadd.s32 4294967294, %s1358_s28   ;;  %s1358_s28 = sphi %s1448_s28, %s1698_s28   ;;  %s1354_s27 = sphi %s1446_s27, %s1697_s27   ;;  %s1350_s26 = sphi %s1444_s26, %s1696_s26   ;;  %s1346_s25 = sphi %s1442_s25, %s1695_s25  }
   0x9   : > { %s1467_s14 = sadd.s32 1, %s1358_s28   ;;  %s311_s15 = sadd.s32 1, %s1354_s27 }
   0xa   : > { %s308_s16 = ssub.s32 %s1358_s28, %s1467_s14  ;;  %p321_p0 = scmp.ne.s32.totalorder %s1354_s27, %s1350_s26 }
   0xb   : > { %p309_p1 = scmp.eq.s32.totalorder %s308_s16, 0  ;;  %p322_p2 = scmp.eq.s32.totalorder %s1463_s29, 1 }
   0xc   : > { %p327_p3 = scmp.ne.s32.totalorder %s1350_s26, %s1346_s25  ;;  %p328_p4 = scmp.eq.s32.totalorder %s1126_s30, 1 }
   0xd   : > { %s1478_s17 = scalar_select %p309_p1, %s1354_s27, %s311_s15  }
   0xe   : > { %p1480_p5 = por %p322_p2, %p321_p0  ;;  %p1484_p6 = por %p328_p4, %p327_p3 }
   0xf   : > { %p1129_p7 = scmp.ge.s32.totalorder %s1358_s28, 1  ;;  %p389_p8 = scmp.lt.s32.totalorder %s1358_s28, 3 }
  0x11   : > { %p390_p9 = pnand %p1129_p7, %p389_p8 }
  0x12   : > { %p432_p10 = scmp.lt.s32.totalorder (!%p390_p9), %s1463_s29, 1  ;;  %s1691_s0 = sld [smem:[#allocation5_spill]] (!%p390_p9) }
  0x13   : > { %393 = sbr.rel (%p390_p9) target bundleno = 2733 (0xaad), region = 72  ;;  %s1692_s3 = sld [smem:[#allocation8_spill]] (!%p390_p9) }
  0x14   : > { %s1693_s1 = sld [smem:[#allocation6_spill]] (!%p390_p9)  ;;  %s1361_s16 = smov (!%p390_p9), 88  }
  0x15   : > { %s1694_s2 = sld [smem:[#allocation7_spill]] (!%p390_p9)  ;;  %s1364_s22 = smov (!%p390_p9), 56  }
  0x16   : > { %s1365_s23 = smov (!%p390_p9), 80   ;;  %s1370_s15 = smov (!%p390_p9), 48  }
  0x18   : > { %s433_s20 = scalar_select %p432_p10, %s1463_s29, 1  ;;  %vm470_vm0 = vcmask 261120   ;;  %v1360_v2 = vmov 32.0   ;;  %v1266_v32 = vld [vmem:[%s1675_s4] ss:$0 sm:$0xff]  ;;  %vm598_vm5 = vcmask 1043456  }
  0x19   : > { %1272 = vrcp.f32 %v1360_v2  ;;  %v1202_v14 = vld [vmem:[%s1692_s3 + $0x8] sm:$0xff]  ;;  %v1201_v15 = vld [vmem:[%s1692_s3] sm:$0xff]  ;;  %vm548_vm6 = vcmask 64512  }
  0x1a   : > { %s1131_s21 = sshll.u32 %s433_s20, 3  ;;  %533 = vmatpush.bf16.msra.mxu1 %v1202_v14  ;;  %v1264_v25 = vld [vmem:[%s1693_s1] ss:$0 sm:$0xff]  ;;  %s1362_s20 = smov 64  }
  0x1b   : > { %s435_s24 = scalar_lea.vmem %s1691_s0, %s1131_s21  ;;  %v1265_v28 = vld [vmem:[%s1694_s2] ss:$0 sm:$0xff]  ;;  %s1363_s21 = smov 96  }
  0x1c   : > { %v1495_v0 = vld [vmem:[%s435_s24] sm:$0xff]  ;;  %s1366_s24 = smov 104   ;;  %s429_s0 = sand.u32 1, %s1350_s26  }
  0x1d   : > { %v471_v1 = vsel %vm470_vm0, %v1495_v0, 0.0  ;;  %v616_v46 = vld [vmem:[%s1676_s5] sm:$0xf]  ;;  %s1130_s1 = sshll.u32 %s429_s0, 3 }
  0x1e   : > { %472 = vadd.xlane.f32.xlu0 %v471_v1  ;;  %534 = vmatpush.bf16.msra.mxu1 %v1201_v15  ;;  %v621_v47 = vsel %vm598_vm5, %v616_v46, 0 }
  0x1f   : > { %v1273_v3 = vpop.eup %1272  ;;  %630 = vmatpush.bf16.msra.mxu3 %v621_v47 }
  0x20   : > { %v475_v4 = vmul.f32 32.0, %v1273_v3  ;;  %vm479_vm1 = vweird.f32 %v1273_v3 }
  0x22   : > { %v476_v5 = vsub.f32 1.0, %v475_v4 }
  0x24   : > { %v477_v6 = vmul.f32 %v1273_v3, %v476_v5 }
  0x26   : > { %v478_v7 = vadd.f32 %v1273_v3, %v477_v6 }
  0x28   : > { %v1499_v8 = vsel %vm479_vm1, %v1273_v3, %v478_v7 }
  0x91   : > { %v473_v9 = vpop.xlane.xlu0 %472 }
  0x92   : > { %v481_v10 = vmul.f32 %v1499_v8, %v473_v9 }
  0x94   : > { %v482_v11 = vsub.f32 %v1495_v0, %v481_v10 }
  0x96   : > { %v483_v12 = vmul.f32 %v482_v11, %v482_v11 }
  0x98   : > { %v484_v13 = vsel %vm470_vm0, %v483_v12, 0.0 }
  0x99   : > { %485 = vadd.xlane.f32.xlu0 %v484_v13 }
 0x10c   : > { %v486_v16 = vpop.xlane.xlu0 %485 }
 0x10d   : > { %v487_v17 = vmul.f32 %v486_v16, %v1499_v8 }
 0x10f   : > { %v488_v18 = vadd.f32 1e-05, %v487_v17 }
 0x111   : > { %1274 = vrsqrt.f32 %v488_v18  ;;  %vm495_vm3 = vweird.f32 %v488_v18 }
 0x117   : > { %v1275_v19 = vpop.eup %1274 }
 0x118   : > { %v490_v20 = vmul.f32 %v1275_v19, %v488_v18  ;;  %vm496_vm2 = vweird.f32 %v1275_v19 }
 0x119   : > { %vm497_vm4 = vmor %vm495_vm3, %vm496_vm2 }
 0x11a   : > { %v491_v21 = vmul.f32 %v1275_v19, %v490_v20 }
 0x11c   : > { %v492_v22 = vmul.f32 0.5, %v491_v21 }
 0x11e   : > { %v493_v23 = vsub.f32 1.5, %v492_v22 }
 0x120   : > { %v494_v24 = vmul.f32 %v1275_v19, %v493_v23  ;;  %v1146_v23 = vld [vmem:[%s1676_s5 + $0x4] sm:$0xf] }
 0x122   : > { %v498_v26 = vsel %vm497_vm4, %v1275_v19, %v494_v24  ;;  %v713_v24 = vsel %vm598_vm5, %v1146_v23, 0 }
 0x123   : > { %v499_v27 = vmul.f32 %v498_v26, %v482_v11  ;;  %722 = vmatpush.bf16.msra.mxu0 %v713_v24 }
 0x125   : > { %v503_v29 = vmul.f32 %v1264_v25, %v499_v27 }
 0x127   : > { %v507_v30 = vadd.f32 %v1265_v28, %v503_v29 }
 0x129   : > { %v508_v31 = vpack.c.bf16 %v507_v30, %v507_v30 }
 0x12b   : > { %1140 = vmatmul.msk.bf16.vlgmr.msra.gmra.mxu1 %vm470_vm0, %v508_v31 }
 0x1a8   : > { %v536_v33 = vpop.f32.mrf.mxu1 }
 0x1a9   : > { %v537_v34 = vadd.f32 %v1266_v32, %v536_v33 }
 0x1ab   : > { %v1521_v35 = vpack.c.bf16 %v537_v34, %v537_v34 }
 0x1ad   : > { %639 = vrot.lane.b32.xlu0 %v1521_v35, %s1361_s16  ;;  %593 = vrot.lane.b32.xlu2 %v1521_v35, %s1362_s20  ;;  %s1367_s16 = smov 120   ;;  %s1368_s20 = smov 112  }
 0x1ae   : > { %546 = vrot.lane.b32.xlu1 %v1521_v35, %s1363_s21  ;;  %s1369_s21 = smov 72  }
 0x1b0   : > { %v538_v36 = vpop.f32.mrf.mxu1 }
 0x207   : > { %v594_v37 = vpop.permute.xlu2 %593 }
 0x208   : > { %v600_v38 = vsel %vm598_vm5, %v594_v37, 0 }
 0x209   : > { %609 = vmatpush.bf16.msra.mxu2 %v600_v38 }
 0x21f   : > { %v640_v39 = vpop.permute.xlu0 %639 }
 0x220   : > { %v547_v40 = vpop.permute.xlu1 %546  ;;  %v645_v41 = vsel %vm548_vm6, %v640_v39, 0 }
 0x221   : > { %v553_v42 = vsel %vm548_vm6, %v547_v40, 0  ;;  %654 = vmatpush.bf16.xpose.msrb.mxu2 %v645_v41 }
 0x222   : > { %562 = vmatpush.bf16.xpose.msrb.mxu1 %v553_v42 }
 0x229   : > { %1141 = vmatmul.msk.bf16.vlgmr.msrb.gmra.mxu1 %vm548_vm6, %v1521_v35 }
 0x2a6   : > { %v564_v43 = vpop.f32.mrf.mxu1 }
 0x2a7   : > { %v568_v44 = vsel %vm548_vm6, %v564_v43, -inf }
 0x2a8   : > { %569 = vmax.xlane.f32.xlu1 %v568_v44 }
 0x2ae   : > { %v566_v45 = vpop.f32.mrf.mxu1 }
 0x2c1   : > { %685 = vrot.lane.b32.xlu1 %v1521_v35, %s1364_s22  ;;  %s431_s22 = scalar_lea.vmem [#allocation2], %s1130_s1  ;;  %s1316_s1 = scalar_lea.hbm %s1684_s13, 16 }
 0x2c9   : > { %731 = vrot.lane.b32.xlu1 %v1521_v35, %s1365_s23  ;;  %s1064_s23 = sshll.u32 %s431_s22, 4  ;;  %s1065_s23 = int_to_ptr.vmem [resolvable:$true] %s1064_s23 }
 0x2d1   : > { %821 = vrot.lane.b32.xlu1 %v1521_v35, %s1366_s24  ;;  %s1198_s24 = sshll.u32 %s1463_s29, 3  ;;  %s1052_s29 = scalar_lea.sflag [#allocation3], %s429_s0 }
 0x31b   : > { %v570_v48 = vpop.xlane.xlu1 %569 }
 0x31c   : > { %v571_v49 = vsub.f32 %v564_v43, %v570_v48 }
 0x31e   : > { %v572_v50 = vmul.f32 1.442695, %v571_v49 }
 0x320   : > { %1276 = vpow2.f32 %v572_v50 }
 0x326   : > { %v1277_v51 = vpop.eup %1276 }
 0x327   : > { %v574_v52 = vsel %vm548_vm6, %v1277_v51, 0.0 }
 0x328   : > { %575 = vadd.xlane.f32.xlu2 %v574_v52 }
 0x333   : > { %v686_v53 = vpop.permute.xlu1 %685 }
 0x334   : > { %v691_v54 = vsel %vm598_vm5, %v686_v53, 0  ;;  %v1267_v53 = vld [vmem:[%s1677_s6] ss:$0 sm:$0xff] }
 0x335   : > { %700 = vmatpush.bf16.msrb.mxu3 %v691_v54  ;;  %v543_v54 = vadd.f32 %v1267_v53, %v1495_v0 }
 0x33b   : > { %v732_v55 = vpop.permute.xlu1 %731 }
 0x33c   : > { %v737_v56 = vsel %vm548_vm6, %v732_v55, 0 }
 0x33d   : > { %746 = vmatpush.bf16.xpose.msra.mxu1 %v737_v56 }
 0x340   : > { %637 = vrot.lane.b32.xlu2 %v1521_v35, %s1367_s16  ;;  %s1371_s16 = smov 40  }
 0x343   : > { %v822_v44 = vpop.permute.xlu1 %821 }
 0x39b   : > { %v576_v57 = vpop.xlane.xlu2 %575 }
 0x39c   : > { %1278 = vrcp.f32 %v576_v57  ;;  %v588_v61 = vand.u32 2147483648, %v576_v57  ;;  %v586_v63 = vand.u32 2147483647, %v576_v57  ;;  %vm582_vm8 = vweird.f32 %v576_v57 }
 0x39e   : > { %v589_v2 = vor.u32 1.1754944e-38, %v588_v61  ;;  %vm587_vm10 = vcmp.eq.f32.partialorder %v586_v63, 8.507059e+37 }
 0x3a2   : > { %v1279_v58 = vpop.eup %1278 }
 0x3a3   : > { %v578_v59 = vmul.f32 %v1279_v58, %v576_v57  ;;  %vm583_vm7 = vweird.f32 %v1279_v58  ;;  %v638_v7 = vpop.permute.xlu2 %637 }
 0x3a4   : > { %vm584_vm9 = vmor %vm582_vm8, %vm583_vm7 }
 0x3a5   : > { %v579_v60 = vsub.f32 1.0, %v578_v59 }
 0x3a7   : > { %v580_v62 = vmul.f32 %v1279_v58, %v579_v60 }
 0x3a9   : > { %v581_v1 = vadd.f32 %v1279_v58, %v580_v62 }
 0x3ab   : > { %v585_v3 = vsel %vm584_vm9, %v1279_v58, %v581_v1 }
 0x3ac   : > { %v590_v4 = vsel %vm587_vm10, %v589_v2, %v585_v3 }
 0x3ad   : > { %v591_v5 = vmul.f32 %v1277_v51, %v590_v4 }
 0x3af   : > { %v592_v6 = vpack.c.bf16 %v591_v5, %v591_v5 }
 0x3b1   : > { %1142 = vmatmul.msk.bf16.vlgmr.msra.gmra.mxu2 %vm548_vm6, %v592_v6 }
 0x3c1   : > { %1144 = vmatmul.msk.bf16.vlgmr.msrb.gmra.mxu2 %vm548_vm6, %v638_v7 }
 0x434   : > { %v611_v9 = vpop.f32.mrf.mxu2 }
 0x435   : > { %v615_v10 = vpack.c.bf16 %v611_v9, %v611_v9 }
 0x437   : > { %1143 = vmatmul.msk.bf16.vlgmr.msra.gmra.mxu3 %vm548_vm6, %v615_v10 }
 0x43c   : > { %v613_v11 = vpop.f32.mrf.mxu2 }
 0x444   : > { %v656_v12 = vpop.f32.mrf.mxu2 }
 0x445   : > { %v660_v13 = vsel %vm548_vm6, %v656_v12, -inf }
 0x446   : > { %661 = vmax.xlane.f32.xlu0 %v660_v13 }
 0x44c   : > { %v658_v14 = vpop.f32.mrf.mxu2 }
 0x45a   : > { %729 = vrot.lane.b32.xlu0 %v1521_v35, %s1368_s20 }
 0x4b9   : > { %v662_v15 = vpop.xlane.xlu0 %661 }
 0x4ba   : > { %v663_v16 = vsub.f32 %v656_v12, %v662_v15  ;;  %v632_v17 = vpop.f32.mrf.mxu3 }
 0x4bb   : > { %v636_v55 = vadd.f32 %v632_v17, %v543_v54 }
 0x4bc   : > { %v664_v18 = vmul.f32 1.442695, %v663_v16 }
 0x4be   : > { %1280 = vpow2.f32 %v664_v18 }
 0x4c2   : > { %v634_v19 = vpop.f32.mrf.mxu3 }
 0x4c3   : > { %v1150_v19 = vld [vmem:[%s1676_s5 + $0x8] sm:$0xf] }
 0x4c4   : > { %v1281_v20 = vpop.eup %1280 }
 0x4c5   : > { %v666_v21 = vsel %vm548_vm6, %v1281_v20, 0.0 }
 0x4c6   : > { %667 = vadd.xlane.f32.xlu2 %v666_v21 }
 0x4cc   : > { %v730_v22 = vpop.permute.xlu0 %729 }
 0x4cd   : > { %1148 = vmatmul.msk.bf16.vlgmr.msra.gmra.mxu1 %vm548_vm6, %v730_v22 }
 0x4de   : > { %823 = vrot.lane.b32.xlu2 %v1521_v35, %s1369_s21  ;;  %s1062_s21 = scalar_lea.hbm %s1684_s13, %s1198_s24 }
 0x4df   : > { %s1066_s2 = sshll.u32 %s1062_s21, 4  ;;  %s1067_s2 = int_to_ptr.hbm [resolvable:$true] %s1066_s2 }
 0x4e0   : > { %s1310_s3 = sshra.s32 %s1067_s2, 4  ;;  %s1311_s3 = int_to_ptr.hbm [resolvable:$true] %s1310_s3 }
 0x4e1   : > { %s1312_s30 = scalar_lea.hbm %s1311_s3, 8  ;;  %p1317_p0 = scmp.lt.s32.totalorder %s1311_s3, %s1684_s13 }
 0x4e2   : > { %p1313_p11 = scmp.ne.s32.totalorder %s1311_s3, %s1312_s30  ;;  %p1318_p1 = scmp.lt.s32.totalorder %s1316_s1, %s1312_s30 }
 0x4e4   : > { %p1314_p12 = pnand %p1313_p11, %p1480_p5  ;;  %p1319_p2 = por %p1318_p1, %p1317_p0 }
 0x4e6   : > { %p1315_p13 = pneg %p1314_p12 }
 0x4e8   : > { %p1320_p3 = pnand %p1319_p2, %p1315_p13 }
 0x539   : > { %v668_v25 = vpop.xlane.xlu2 %667 }
 0x53a   : > { %1282 = vrcp.f32 %v668_v25  ;;  %v680_v31 = vand.u32 2147483648, %v668_v25  ;;  %v678_v33 = vand.u32 2147483647, %v668_v25  ;;  %vm674_vm12 = vweird.f32 %v668_v25 }
 0x53c   : > { %v681_v36 = vor.u32 1.1754944e-38, %v680_v31  ;;  %vm679_vm14 = vcmp.eq.f32.partialorder %v678_v33, 8.507059e+37 }
 0x540   : > { %v1283_v26 = vpop.eup %1282 }
 0x541   : > { %v670_v27 = vmul.f32 %v1283_v26, %v668_v25  ;;  %v824_v28 = vpop.permute.xlu2 %823  ;;  %vm675_vm11 = vweird.f32 %v1283_v26 }
 0x542   : > { %v829_v29 = vsel %vm548_vm6, %v824_v28, 0  ;;  %vm676_vm13 = vmor %vm674_vm12, %vm675_vm11 }
 0x543   : > { %v671_v30 = vsub.f32 1.0, %v670_v27  ;;  %838 = vmatpush.bf16.xpose.msrb.mxu0 %v829_v29 }
 0x545   : > { %v672_v32 = vmul.f32 %v1283_v26, %v671_v30 }
 0x547   : > { %v673_v34 = vadd.f32 %v1283_v26, %v672_v32 }
 0x549   : > { %v677_v37 = vsel %vm676_vm13, %v1283_v26, %v673_v34 }
 0x54a   : > { %v748_v38 = vpop.f32.mrf.mxu1  ;;  %v682_v39 = vsel %vm679_vm14, %v681_v36, %v677_v37 }
 0x54b   : > { %v752_v40 = vsel %vm548_vm6, %v748_v38, -inf  ;;  %v683_v41 = vmul.f32 %v1281_v20, %v682_v39  ;;  %v805_v20 = vsel %vm598_vm5, %v1150_v19, 0  ;;  %v1154_v39 = vld [vmem:[%s1676_s5 + $0xc] sm:$0xf] }
 0x54c   : > { %753 = vmax.xlane.f32.xlu1 %v752_v40  ;;  %814 = vmatpush.bf16.msra.mxu3 %v805_v20  ;;  %v897_v40 = vsel %vm598_vm5, %v1154_v39, 0 }
 0x54d   : > { %v684_v42 = vpack.c.bf16 %v683_v41, %v683_v41 }
 0x54f   : > { %1145 = vmatmul.msk.bf16.vlgmr.msrb.gmra.mxu3 %vm548_vm6, %v684_v42 }
 0x552   : > { %v750_v43 = vpop.f32.mrf.mxu1 }
 0x5bf   : > { %v754_v45 = vpop.xlane.xlu1 %753 }
 0x5c0   : > { %v755_v46 = vsub.f32 %v748_v38, %v754_v45 }
 0x5c2   : > { %v756_v47 = vmul.f32 1.442695, %v755_v46 }
 0x5c4   : > { %1284 = vpow2.f32 %v756_v47 }
 0x5ca   : > { %v1285_v48 = vpop.eup %1284 }
 0x5cb   : > { %v758_v49 = vsel %vm548_vm6, %v1285_v48, 0.0 }
 0x5cc   : > { %759 = vadd.xlane.f32.xlu2 %v758_v49 }
 0x5d2   : > { %v702_v50 = vpop.f32.mrf.mxu3 }
 0x5d3   : > { %v706_v51 = vpack.c.bf16 %v702_v50, %v702_v50 }
 0x5d5   : > { %1147 = vmatmul.msk.bf16.vlgmr.msra.gmra.mxu0 %vm548_vm6, %v706_v51 }
 0x5da   : > { %v704_v52 = vpop.f32.mrf.mxu3 }
 0x5e5   : > { %1152 = vmatmul.msk.bf16.vlgmr.msrb.gmra.mxu0 %vm548_vm6, %v822_v44 }
 0x63f   : > { %v760_v62 = vpop.xlane.xlu2 %759 }
 0x640   : > { %1286 = vrcp.f32 %v760_v62  ;;  %v772_v7 = vand.u32 2147483648, %v760_v62  ;;  %vm766_vm1 = vweird.f32 %v760_v62  ;;  %v770_v9 = vand.u32 2147483647, %v760_v62 }
 0x642   : > { %v773_v13 = vor.u32 1.1754944e-38, %v772_v7  ;;  %vm771_vm3 = vcmp.eq.f32.partialorder %v770_v9, 8.507059e+37 }
 0x646   : > { %v1287_v63 = vpop.eup %1286 }
 0x647   : > { %v762_v1 = vmul.f32 %v1287_v63, %v760_v62  ;;  %vm767_vm15 = vweird.f32 %v1287_v63 }
 0x648   : > { %vm768_vm2 = vmor %vm766_vm1, %vm767_vm15 }
 0x649   : > { %v763_v2 = vsub.f32 1.0, %v762_v1 }
 0x64b   : > { %v764_v5 = vmul.f32 %v1287_v63, %v763_v2 }
 0x64d   : > { %v765_v6 = vadd.f32 %v1287_v63, %v764_v5 }
 0x64f   : > { %v769_v11 = vsel %vm768_vm2, %v1287_v63, %v765_v6 }
 0x650   : > { %v774_v14 = vsel %vm771_vm3, %v773_v13, %v769_v11  ;;  %v1211_v11 = vld [vmem:[%s1682_s11 + $0x30] sm:$0xff]  ;;  %v1209_v13 = vld [vmem:[%s1682_s11 + $0x20] sm:$0xff] }
 0x651   : > { %v775_v15 = vmul.f32 %v1285_v48, %v774_v14  ;;  %v1208_v14 = vld [vmem:[%s1682_s11 + $0x18] sm:$0xff] }
 0x652   : > { %v724_v56 = vpop.f32.mrf.mxu0 }
 0x653   : > { %v1565_v57 = vadd.f32 %v724_v56, %v636_v55  ;;  %v776_v18 = vpack.c.bf16 %v775_v15, %v775_v15  ;;  %v1204_v56 = vld [vmem:[%s1680_s9 + $0x8] sm:$0xff]  ;;  %v1207_v15 = vld [vmem:[%s1682_s11 + $0x10] sm:$0xff] }
 0x654   : > { %968 = vmatpush.bf16.msrb.mxu3 %v1204_v56 }
 0x65a   : > { %v726_v58 = vpop.f32.mrf.mxu0 }
 0x65b   : > { %v1212_v58 = vld [vmem:[%s1682_s11 + $0x38] sm:$0xff] }
 0x65c   : > { %1036 = vmatpush.bf16.msra.mxu0 %v1212_v58 }
 0x660   : > { %1037 = vmatpush.bf16.msra.mxu0 %v1211_v11 }
 0x662   : > { %v840_v59 = vpop.f32.mrf.mxu0 }
 0x663   : > { %v844_v60 = vsel %vm548_vm6, %v840_v59, -inf }
 0x664   : > { %845 = vmax.xlane.f32.xlu0 %v844_v60 }
 0x66a   : > { %v842_v61 = vpop.f32.mrf.mxu0 }
 0x678   : > { %777 = vrot.lane.b32.xlu0 %v1521_v35, %s1370_s15 }
 0x6d7   : > { %v846_v3 = vpop.xlane.xlu0 %845 }
 0x6d8   : > { %v847_v0 = vsub.f32 %v840_v59, %v846_v3 }
 0x6da   : > { %v848_v4 = vmul.f32 1.442695, %v847_v0 }
 0x6dc   : > { %1288 = vpow2.f32 %v848_v4  ;;  %v1268_v4 = vld [vmem:[%s1678_s7] ss:$0 sm:$0xff] }
 0x6e2   : > { %v1289_v10 = vpop.eup %1288 }
 0x6e3   : > { %v850_v12 = vsel %vm548_vm6, %v1289_v10, 0.0 }
 0x6e4   : > { %851 = vadd.xlane.f32.xlu1 %v850_v12  ;;  %v1210_v12 = vld [vmem:[%s1682_s11 + $0x28] sm:$0xff] }
 0x6e5   : > { %1038 = vmatpush.bf16.msra.mxu0 %v1210_v12 }
 0x6e9   : > { %1039 = vmatpush.bf16.msra.mxu0 %v1209_v13 }
 0x6ea   : > { %v778_v16 = vpop.permute.xlu0 %777 }
 0x6eb   : > { %v783_v17 = vsel %vm598_vm5, %v778_v16, 0  ;;  %v1206_v16 = vld [vmem:[%s1682_s11 + $0x8] sm:$0xff] }
 0x6ec   : > { %792 = vmatpush.bf16.msra.mxu2 %v783_v17  ;;  %v1205_v17 = vld [vmem:[%s1682_s11] sm:$0xff] }
 0x6ed   : > { %1040 = vmatpush.bf16.msra.mxu0 %v1208_v14 }
 0x6ef   : > { %1149 = vmatmul.msk.bf16.vlgmr.msra.gmra.mxu2 %vm548_vm6, %v776_v18  ;;  %v1270_v18 = vld [vmem:[%s1681_s10] ss:$0 sm:$0xff] }
 0x6f0   : > { %906 = vmatpush.bf16.msrb.mxu2 %v897_v40 }
 0x6f1   : > { %1041 = vmatpush.bf16.msra.mxu0 %v1207_v15 }
 0x6f5   : > { %1042 = vmatpush.bf16.msra.mxu0 %v1206_v16 }
 0x6f9   : > { %1043 = vmatpush.bf16.msra.mxu0 %v1205_v17 }
 0x6fd   : > { %869 = vrot.lane.b32.xlu1 %v1521_v35, %s1371_s16 }
 0x757   : > { %v852_v21 = vpop.xlane.xlu1 %851 }
 0x758   : > { %1290 = vrcp.f32 %v852_v21  ;;  %v864_v27 = vand.u32 2147483648, %v852_v21  ;;  %vm858_vm7 = vweird.f32 %v852_v21  ;;  %v862_v28 = vand.u32 2147483647, %v852_v21 }
 0x75a   : > { %v865_v29 = vor.u32 1.1754944e-38, %v864_v27  ;;  %vm863_vm9 = vcmp.eq.f32.partialorder %v862_v28, 8.507059e+37 }
 0x75e   : > { %v1291_v22 = vpop.eup %1290 }
 0x75f   : > { %v854_v23 = vmul.f32 %v1291_v22, %v852_v21  ;;  %vm859_vm4 = vweird.f32 %v1291_v22 }
 0x760   : > { %vm860_vm8 = vmor %vm858_vm7, %vm859_vm4 }
 0x761   : > { %v855_v24 = vsub.f32 1.0, %v854_v23 }
 0x763   : > { %v856_v25 = vmul.f32 %v1291_v22, %v855_v24 }
 0x765   : > { %v857_v26 = vadd.f32 %v1291_v22, %v856_v25 }
 0x767   : > { %v861_v35 = vsel %vm860_vm8, %v1291_v22, %v857_v26 }
 0x768   : > { %v866_v30 = vsel %vm863_vm9, %v865_v29, %v861_v35 }
 0x769   : > { %v867_v31 = vmul.f32 %v1289_v10, %v866_v30 }
 0x76b   : > { %v868_v36 = vpack.c.bf16 %v867_v31, %v867_v31  ;;  %v1271_v31 = vld [vmem:[%s1683_s12] ss:$0 sm:$0xff] }
 0x76f   : > { %v870_v32 = vpop.permute.xlu1 %869 }
 0x770   : > { %v875_v33 = vsel %vm598_vm5, %v870_v32, 0 }
 0x771   : > { %884 = vmatpush.bf16.msrb.mxu1 %v875_v33 }
 0x772   : > { %v794_v34 = vpop.f32.mrf.mxu2 }
 0x773   : > { %v798_v37 = vpack.c.bf16 %v794_v34, %v794_v34 }
 0x774   : > { %1153 = vmatmul.msk.bf16.vlgmr.msrb.gmra.mxu1 %vm548_vm6, %v868_v36 }
 0x775   : > { %1151 = vmatmul.msk.bf16.vlgmr.msra.gmra.mxu3 %vm548_vm6, %v798_v37 }
 0x77a   : > { %v796_v38 = vpop.f32.mrf.mxu2 }
 0x7f1   : > { %v886_v41 = vpop.f32.mrf.mxu1 }
 0x7f2   : > { %v890_v42 = vpack.c.bf16 %v886_v41, %v886_v41 }
 0x7f4   : > { %1155 = vmatmul.msk.bf16.vlgmr.msrb.gmra.mxu2 %vm548_vm6, %v890_v42 }
 0x7f8   : > { %v816_v43 = vpop.f32.mrf.mxu3 }
 0x7f9   : > { %v820_v44 = vadd.f32 %v816_v43, %v1565_v57  ;;  %v888_v45 = vpop.f32.mrf.mxu1  ;;  %v1203_v57 = vld [vmem:[%s1680_s9] sm:$0xff] }
 0x7fa   : > { %969 = vmatpush.bf16.msrb.mxu3 %v1203_v57 }
 0x800   : > { %v818_v46 = vpop.f32.mrf.mxu3 }
 0x877   : > { %v908_v47 = vpop.f32.mrf.mxu2 }
 0x878   : > { %v1586_v48 = vadd.f32 %v908_v47, %v820_v44 }
 0x87a   : > { %v913_v49 = vsel %vm470_vm0, %v1586_v48, 0.0 }
 0x87b   : > { %914 = vadd.xlane.f32.xlu2 %v913_v49 }
 0x87f   : > { %v910_v50 = vpop.f32.mrf.mxu2 }
 0x8ee   : > { %v915_v51 = vpop.xlane.xlu2 %914 }
 0x8ef   : > { %v916_v52 = vmul.f32 %v915_v51, %v1499_v8 }
 0x8f1   : > { %v917_v53 = vsub.f32 %v1586_v48, %v916_v52 }
 0x8f3   : > { %v918_v54 = vmul.f32 %v917_v53, %v917_v53 }
 0x8f5   : > { %v919_v55 = vsel %vm470_vm0, %v918_v54, 0.0 }
 0x8f6   : > { %920 = vadd.xlane.f32.xlu2 %v919_v55 }
 0x969   : > { %v921_v59 = vpop.xlane.xlu2 %920 }
 0x96a   : > { %v922_v60 = vmul.f32 %v921_v59, %v1499_v8  ;;  %v1269_v8 = vld [vmem:[%s1679_s8] ss:$0 sm:$0xff] }
 0x96c   : > { %v923_v61 = vadd.f32 1e-05, %v922_v60 }
 0x96e   : > { %1292 = vrsqrt.f32 %v923_v61  ;;  %vm930_vm6 = vweird.f32 %v923_v61 }
 0x974   : > { %v1293_v62 = vpop.eup %1292 }
 0x975   : > { %v925_v63 = vmul.f32 %v1293_v62, %v923_v61  ;;  %vm931_vm5 = vweird.f32 %v1293_v62 }
 0x976   : > { %vm932_vm10 = vmor %vm930_vm6, %vm931_vm5 }
 0x977   : > { %v926_v1 = vmul.f32 %v1293_v62, %v925_v63 }
 0x979   : > { %v927_v2 = vmul.f32 0.5, %v926_v1 }
 0x97b   : > { %v928_v3 = vsub.f32 1.5, %v927_v2 }
 0x97d   : > { %v929_v0 = vmul.f32 %v1293_v62, %v928_v3 }
 0x97f   : > { %v933_v5 = vsel %vm932_vm10, %v1293_v62, %v929_v0 }
 0x980   : > { %v934_v6 = vmul.f32 %v933_v5, %v917_v53 }
 0x982   : > { %v938_v7 = vmul.f32 %v1268_v4, %v934_v6 }
 0x984   : > { %v942_v9 = vadd.f32 %v1269_v8, %v938_v7 }
 0x986   : > { %v943_v10 = vpack.c.bf16 %v942_v9, %v942_v9 }
 0x988   : > { %1164 = vmatmul.msk.bf16.vlgmr.msrb.gmra.mxu3 %vm470_vm0, %v943_v10 }
 0xa0b   : > { %v971_v19 = vpop.f32.mrf.mxu3 }
 0xa0c   : > { %v972_v20 = vadd.f32 %v1270_v18, %v971_v19 }
 0xa0e   : > { %v975_v21 = vmul.f32 %v972_v20, %v972_v20 }
 0xa10   : > { %v976_v22 = vmul.f32 %v975_v21, %v972_v20 }
 0xa12   : > { %v977_v23 = vmul.f32 0.044715, %v976_v22 }
 0xa13   : > { %v973_v24 = vpop.f32.mrf.mxu3 }
 0xa14   : > { %v978_v25 = vadd.f32 %v977_v23, %v972_v20 }
 0xa16   : > { %v979_v26 = vmul.f32 0.7978846, %v978_v25 }
 0xa18   : > { %1294 = vtanh.f32 %v979_v26 }
 0xa1e   : > { %v1295_v27 = vpop.eup %1294 }
 0xa1f   : > { %v981_v28 = vadd.f32 1.0, %v1295_v27 }
 0xa21   : > { %v982_v35 = vmul.f32 0.5, %v981_v28 }
 0xa23   : > { %v983_v29 = vmul.f32 %v982_v35, %v972_v20 }
 0xa25   : > { %v984_v30 = vpack.c.bf16 %v983_v29, %v983_v29 }
 0xa27   : > { %1044 = vmatmul.bf16.vlgmr.msra.gmra.mxu0 %v984_v30 }
 0xaa4   : > { %v1045_v32 = vpop.f32.mrf.mxu0 }
 0xaa5   : > { %v1046_v33 = vadd.f32 %v1271_v31, %v1045_v32 }
 0xaa7   : > { %v1049_v34 = vadd.f32 %v1046_v33, %v1586_v48 }
 0xaa9   : > { %1050 = vst.msk [vmem:[%s431_s22] sm:$0xff] %vm470_vm0, %v1049_v34 }
 0xaaa   : > { %1323 = shalt.err (!%p1320_p3)
}
 0xaab   : > { %1213 = dma.vmem_to_hbm [thread:$0]  (%p1480_p5), %s1065_s23, 128, %s1067_s2, %s1052_s29  }
 0xaac   : > { %v1047_v36 = vpop.f32.mrf.mxu0 }
 0xaad PF: > { %p1219_p4 = scmp.ge.s32.totalorder %s1358_s28, 2  ;;  %s1078_s0 = sand.u32 1, %s1346_s25  }
 0xaae   : > { %s1079_s21 = scalar_lea.sflag [#allocation3], %s1078_s0 }
 0xaaf   : > { %p1216_p7 = pnand %p1219_p4, %p1484_p6 }
 0xab1   : > { %p1217_p8 = pneg %p1216_p7 }
 0xab3   : > { %1341 = dma.done.wait (%p1217_p8), %s1079_s21, 128  }
 0xab4   : > { %1343 = vsyncadd (%p1217_p8), %s1079_s21, 4294967168  ;;  %p23_p9 = scmp.ge.s32.totalorder %s1467_s14, 4   ;;  %s1695_s25 = smov %s1350_s26 }
 0xab5   : > { %s1696_s26 = smov %s1354_s27  ;;  %s1697_s27 = smov %s1478_s17 }
 0xab6   : > { %s1698_s28 = smov %s1467_s14  ;;  %25 = sbr.rel (!%p23_p9) target bundleno = 8 (0x8), region = 110 }
 0xabb   :  { %1085 = vsyncpa [#allocation3], 1 }
 0xabc   :  { %1087 = vsyncpa [#allocation3 + $0x1], 1 }

</bundles_post_ra>
